<compile_context>
chip_gen: v5e
topology: v5e:2x2
jax: 0.10.0
libtpu: 0.0.40
codegen_flags: <defaults>
</compile_context>

<pallas_src>
import jax
import jax.numpy as jnp
from jax.experimental import pallas as pl
from jax.experimental.pallas import tpu as pltpu


# ---------------------------------------------------------------------------
# Positional grid, built exactly like SoftPositionEmbed._build_grid.
# ---------------------------------------------------------------------------
def build_grid(resolution):
    ranges = [jnp.linspace(0.0, 1.0, num=r) for r in resolution]
    g = jnp.meshgrid(*ranges, sparse=False, indexing="ij")
    g = jnp.stack(g, axis=-1)
    g = jnp.reshape(g, (resolution[0], resolution[1], -1))
    g = g[None].astype(jnp.float32)                        # (1, H, W, 2)
    g = jnp.concatenate([g, 1.0 - g], axis=-1)             # (1, H, W, 4)
    # Matches the PyTorch buffer: .reshape(grid.shape[0], -1, grid.shape[1])
    return jnp.reshape(g, (1, -1, resolution[0]))          # (1, 4*W, H)


# ---------------------------------------------------------------------------
# Fused kernel:
#   pos = grid_block @ W^T + b        (one MXU matmul per S-block, batch-independent)
#   out[b, s, :] = x[b, s, :] + pos[s, :]   (broadcast over the whole batch block)
# ---------------------------------------------------------------------------
def _soft_pos_embed_kernel(g_ref, w_ref, b_ref, x_ref, o_ref):
    pos = jnp.dot(g_ref[...], w_ref[...],
                  preferred_element_type=jnp.float32) + b_ref[...]   # (bs, H) f32
    o_ref[...] = x_ref[...] + pos                                     # bcast over B


def soft_position_embed(inputs, weight, bias, pos_grid):
    """inputs: (B, S, H) f32; weight: (H, H) PyTorch Linear layout (out, in);
    bias: (H,); pos_grid: (1, S, H) buffer from build_grid."""
    if pos_grid.ndim == 3:
        pos_grid = pos_grid[0]                              # (S, H)
    B, S, H = inputs.shape
    assert pos_grid.shape == (S, H), (pos_grid.shape, inputs.shape)
    assert weight.shape == (H, H) and bias.shape == (H,)

    # Split the S (row) axis into two "parallel" blocks when it stays a multiple of 8:
    # both v7x TensorCores get work, and each block computes only its own rows of
    # dense(grid) -> the projection is done exactly once in total, never per batch.
    n_blk = 2 if (S % 16 == 0 and S >= 16) else 1
    bs = S // n_blk

    w_t = weight.T.astype(jnp.float32)                      # (H_in, H_out): pos = g @ w_t
    b_row = bias.reshape(1, H).astype(jnp.float32)

    return pl.pallas_call(
        _soft_pos_embed_kernel,
        out_shape=jax.ShapeDtypeStruct((B, S, H), jnp.float32),
        grid_spec=pltpu.PrefetchScalarGridSpec(
            num_scalar_prefetch=0,
            grid=(n_blk,),
            in_specs=[
                pl.BlockSpec((bs, H), lambda i: (i, 0)),        # grid rows of this block
                pl.BlockSpec((H, H), lambda i: (0, 0)),         # W^T (shared)
                pl.BlockSpec((1, H), lambda i: (0, 0)),         # bias (shared)
                pl.BlockSpec((B, bs, H), lambda i: (0, i, 0)),  # whole batch per step
            ],
            out_specs=pl.BlockSpec((B, bs, H), lambda i: (0, i, 0)),
        ),
        compiler_params=pltpu.CompilerParams(
            dimension_semantics=("parallel",)),
    )(pos_grid.astype(jnp.float32), w_t, b_row, inputs.astype(jnp.float32))


if __name__ == "__main__":
    # The module's reshape makes the Linear act on a last dim of size resolution[0],
    # so hidden_size must equal resolution[0].  H = 128 keeps the stores lane-dense.
    B = 2
    HIDDEN = 128
    RESOLUTION = (128, 16)            # -> grid buffer (1, 4*16, 128) = (1, 64, 128)

    key = jax.random.PRNGKey(0)
    kw, kb, kx = jax.random.split(key, 3)
    weight = (0.1 * jax.random.normal(kw, (HIDDEN, HIDDEN))).astype(jnp.float32)
    bias = (0.1 * jax.random.normal(kb, (HIDDEN,))).astype(jnp.float32)

    pos_grid = build_grid(RESOLUTION)                       # (1, 64, 128)
    S = pos_grid.shape[1]
    x = jax.random.normal(kx, (B, S, HIDDEN), dtype=jnp.float32)

    fwd = jax.jit(soft_position_embed)
    out = fwd(x, weight, bias, pos_grid)
    jax.block_until_ready(out)

    # Pure-JAX reference of the PyTorch forward: inputs + dense(grid).
    ref = x + (jnp.dot(pos_grid[0], weight.T,
                       preferred_element_type=jnp.float32) + bias)[None]
    assert out.shape == (B, S, HIDDEN), out.shape
    assert out.dtype == jnp.float32
    assert bool(jnp.all(jnp.isfinite(out)))
    err = float(jnp.max(jnp.abs(out - ref)))
    assert err < 1e-3, err
    print("KERNEL_OK")
</pallas_src>

<mosaic_0001>
module attributes {stable_mosaic.version = 11 : i64} {
  func.func @_soft_pos_embed_kernel(%arg0: i32, %arg1: memref<32x128xf32, #tpu.memory_space<vmem>>, %arg2: memref<128x128xf32, #tpu.memory_space<vmem>>, %arg3: memref<1x128xf32, #tpu.memory_space<vmem>>, %arg4: memref<2x32x128xf32, #tpu.memory_space<vmem>>, %arg5: memref<2x32x128xf32, #tpu.memory_space<vmem>>) attributes {dimension_semantics = [#tpu.dimension_semantics<parallel>], iteration_bounds = array<i64: 2>, scalar_prefetch = 0 : i64, scratch_operands = 0 : i64, tpu.core_type = #tpu.core_type<tc>, window_params = [{transform_indices = @transform_0, window_bounds = array<i64: 32, 128>}, {pipeline_mode = #tpu.pipeline_mode<synchronous>, transform_indices = @transform_1, window_bounds = array<i64: 128, 128>}, {pipeline_mode = #tpu.pipeline_mode<synchronous>, transform_indices = @transform_2, window_bounds = array<i64: 1, 128>}, {transform_indices = @transform_3, window_bounds = array<i64: 2, 32, 128>}, {transform_indices = @transform_4, window_bounds = array<i64: 2, 32, 128>}]} {
    %c0 = arith.constant 0 : index
    %c0_0 = arith.constant 0 : index
    %0 = vector.load %arg1[%c0, %c0_0] : memref<32x128xf32, #tpu.memory_space<vmem>>, vector<32x128xf32>
    %c0_1 = arith.constant 0 : index
    %c0_2 = arith.constant 0 : index
    %1 = vector.load %arg2[%c0_1, %c0_2] : memref<128x128xf32, #tpu.memory_space<vmem>>, vector<128x128xf32>
    %cst = arith.constant dense<0.000000e+00> : vector<32x128xf32>
    %2 = tpu.matmul %0, %1, %cst {dimension_numbers = #tpu.dot_dimension_numbers<[1], [0], [0], [1], [0, 0, 1, 1], [], []>} : vector<32x128xf32>, vector<128x128xf32>, vector<32x128xf32> -> vector<32x128xf32>
    %c0_3 = arith.constant 0 : index
    %c0_4 = arith.constant 0 : index
    %3 = vector.load %arg3[%c0_3, %c0_4] : memref<1x128xf32, #tpu.memory_space<vmem>>, vector<1x128xf32>
    %4 = vector.broadcast %3 : vector<1x128xf32> to vector<32x128xf32>
    %5 = arith.addf %2, %4 : vector<32x128xf32>
    %c0_5 = arith.constant 0 : index
    %c0_6 = arith.constant 0 : index
    %c0_7 = arith.constant 0 : index
    %6 = vector.load %arg4[%c0_5, %c0_6, %c0_7] : memref<2x32x128xf32, #tpu.memory_space<vmem>>, vector<2x32x128xf32>
    %7 = vector.shape_cast %5 : vector<32x128xf32> to vector<1x32x128xf32>
    %8 = vector.broadcast %7 : vector<1x32x128xf32> to vector<2x32x128xf32>
    %9 = arith.addf %6, %8 : vector<2x32x128xf32>
    %c0_8 = arith.constant 0 : index
    %c0_9 = arith.constant 0 : index
    %c0_10 = arith.constant 0 : index
    %10 = vector.load %arg5[%c0_8, %c0_9, %c0_10] : memref<2x32x128xf32, #tpu.memory_space<vmem>>, vector<2x32x128xf32>
    tpu.vector_store %arg5[%c0_8, %c0_9, %c0_10], %9 {strides = array<i32>} : memref<2x32x128xf32, #tpu.memory_space<vmem>>, vector<2x32x128xf32>,
    return
  }
  func.func @transform_0(%arg0: i32) -> (i32, i32) {
    %c0_i32 = arith.constant 0 : i32
    %c0_i32_0 = arith.constant 0 : i32
    return %arg0, %c0_i32 : i32, i32
  }
  func.func @transform_1(%arg0: i32) -> (i32, i32) {
    %c0_i32 = arith.constant 0 : i32
    %c0_i32_0 = arith.constant 0 : i32
    %c0_i32_1 = arith.constant 0 : i32
    return %c0_i32, %c0_i32_0 : i32, i32
  }
  func.func @transform_2(%arg0: i32) -> (i32, i32) {
    %c0_i32 = arith.constant 0 : i32
    %c0_i32_0 = arith.constant 0 : i32
    %c0_i32_1 = arith.constant 0 : i32
    return %c0_i32, %c0_i32_0 : i32, i32
  }
  func.func @transform_3(%arg0: i32) -> (i32, i32, i32) {
    %c0_i32 = arith.constant 0 : i32
    %c0_i32_0 = arith.constant 0 : i32
    %c0_i32_1 = arith.constant 0 : i32
    return %c0_i32, %arg0, %c0_i32_0 : i32, i32, i32
  }
  func.func @transform_4(%arg0: i32) -> (i32, i32, i32) {
    %c0_i32 = arith.constant 0 : i32
    %c0_i32_0 = arith.constant 0 : i32
    %c0_i32_1 = arith.constant 0 : i32
    return %c0_i32, %arg0, %c0_i32_0 : i32, i32, i32
  }
}

</mosaic_0001>

<bundles_post_ra>
// kernel: soft_position_embed.1
= control target key start
LH: loop header
LB: loop body
LE: loop exit
PB: predicated region body
PF: predicated region fallthrough
CT: control target
= control target key end

     0   :  { %9 = vsyncpa [#allocation4], 0  ;;  %s820_s0 = inlined_call_operand.vmem [shape: f32[64,128], index: 0, kind: input, shape index: {}]   ;;  %s821_s1 = inlined_call_operand.vmem [shape: f32[128,128], index: 1, kind: input, shape index: {}]   ;;  %s822_s2 = inlined_call_operand.vmem [shape: f32[1,128], index: 2, kind: input, shape index: {}]   ;;  %s823_s3 = inlined_call_operand.vmem [shape: f32[2,64,128], index: 3, kind: input, shape index: {}]   ;;  %s824_s4 = inlined_call_operand.hbm [shape: f32[2,64,128], index: 4, kind: output, shape index: {}]  }
   0x1   :  { %11 = vsyncpa [#allocation4 + $0x1], 0  ;;  %s667_s15 = smov 0   ;;  %s669_s16 = smov 0  }
   0x2   :  { %s671_s17 = smov 0   ;;  %s673_s18 = smov 0  }
   0x3 LB: > { %s688_s19 = sadd.s32 4294967295, %s633_s18   ;;  %s480_s20 = sadd.s32 4294967294, %s633_s18   ;;  %s633_s18 = sphi %s673_s18, %s830_s18   ;;  %s629_s17 = sphi %s671_s17, %s829_s17   ;;  %s625_s16 = sphi %s669_s16, %s828_s16   ;;  %s621_s15 = sphi %s667_s15, %s827_s15  }
   0x4   : > { %s692_s21 = sadd.s32 1, %s633_s18   ;;  %s92_s22 = sadd.s32 1, %s629_s17 }
   0x5   : > { %s89_s23 = ssub.s32 %s633_s18, %s692_s21  ;;  %p99_p0 = scmp.ne.s32.totalorder %s629_s17, %s625_s16 }
   0x6   : > { %p90_p1 = scmp.eq.s32.totalorder %s89_s23, 0  ;;  %p100_p2 = scmp.eq.s32.totalorder %s633_s18, 0 }
   0x7   : > { %p129_p3 = scmp.eq.s32.totalorder %s688_s19, 1  ;;  %p134_p4 = scmp.ne.s32.totalorder %s625_s16, %s621_s15 }
   0x8   : > { %s704_s24 = scalar_select %p90_p1, %s629_s17, %s92_s22  }
   0x9   : > { %p101_p5 = por %p100_p2, %p99_p0  ;;  %p706_p6 = por %p129_p3, %p99_p0 }
   0xa   : > { %p135_p7 = scmp.eq.s32.totalorder %s480_s20, 1  ;;  %p482_p9 = scmp.ge.s32.totalorder %s633_s18, 2 }
   0xc   : > { %p710_p8 = por %p135_p7, %p134_p4  ;;  %157 = sbr.rel (%p482_p9) target bundleno = 29 (0x1d), region = 24 }
  0x11   : > { %169 = sbr.rel (!%p101_p5) target bundleno = 29 (0x1d), region = 32  ;;  %s171_s27 = sand.u32 (%p101_p5), 1, %s629_s17  }
  0x12   : > { %s496_s28 = sshll.u32 (%p101_p5), %s633_s18, 5  ;;  %s483_s29 = sshll.u32 (%p101_p5), %s171_s27, 6 }
  0x13   : > { %s176_s6 = scalar_lea.vmem (%p101_p5), %s823_s3, %s496_s28  ;;  %s173_s7 = scalar_lea.vmem (%p101_p5), [#allocation2], %s483_s29 }
  0x14   : > { %v219_v0 = vld [vmem:[%s176_s6] sm:$0xff] (%p101_p5)  ;;  %v221_v1 = vld [vmem:[%s176_s6 + $0x8] sm:$0xff] (%p101_p5)  ;;  %v223_v2 = vld [vmem:[%s176_s6 + $0x10] sm:$0xff] (%p101_p5) }
  0x15   : > { %220 = vst [vmem:[%s173_s7] sm:$0xff] (%p101_p5), %v219_v0  ;;  %v225_v3 = vld [vmem:[%s176_s6 + $0x18] sm:$0xff] (%p101_p5)  ;;  %v227_v4 = vld [vmem:[%s176_s6 + $0x40] sm:$0xff] (%p101_p5)  ;;  %v229_v5 = vld [vmem:[%s176_s6 + $0x48] sm:$0xff] (%p101_p5) }
  0x16   : > { %222 = vst [vmem:[%s173_s7 + $0x8] sm:$0xff] %v221_v1  ;;  %v231_v6 = vld [vmem:[%s176_s6 + $0x50] sm:$0xff]  ;;  %v233_v7 = vld [vmem:[%s176_s6 + $0x58] sm:$0xff] }
  0x17   : > { %224 = vst [vmem:[%s173_s7 + $0x10] sm:$0xff] %v223_v2 }
  0x18   : > { %226 = vst [vmem:[%s173_s7 + $0x18] sm:$0xff] %v225_v3 }
  0x19   : > { %228 = vst [vmem:[%s173_s7 + $0x20] sm:$0xff] %v227_v4 }
  0x1a   : > { %230 = vst [vmem:[%s173_s7 + $0x28] sm:$0xff] %v229_v5 }
  0x1b   : > { %232 = vst [vmem:[%s173_s7 + $0x30] sm:$0xff] %v231_v6 }
  0x1c   : > { %234 = vst [vmem:[%s173_s7 + $0x38] sm:$0xff] %v233_v7 }
  0x1d PF: > { %p486_p10 = scmp.ge.s32.totalorder %s633_s18, 1  ;;  %p239_p11 = scmp.lt.s32.totalorder %s633_s18, 3 }
  0x1f   : > { %p240_p12 = pnand %p486_p10, %p239_p11 }
  0x20   : > { %s489_s7 = sshll.u32 (!%p240_p12), %s688_s19, 2  ;;  %s246_s11 = sand.u32 (!%p240_p12), 1, %s625_s16  }
  0x21   : > { %243 = sbr.rel (%p240_p12) target bundleno = 220 (0xdc), region = 70  ;;  %p277_p13 = scmp.lt.s32.totalorder (!%p240_p12), %s489_s7, 7 }
  0x22   : > { %s487_s12 = sshll.u32 (!%p240_p12), %s246_s11, 6  ;;  %s362_s23 = scalar_lea.sflag (!%p240_p12), [#allocation4], %s246_s11 }
  0x23   : > { %s248_s20 = scalar_lea.vmem (!%p240_p12), [#allocation2], %s487_s12  ;;  %s275_s22 = scalar_lea.vmem (!%p240_p12), [#allocation3], %s487_s12 }
  0x26   : > { %v303_v8 = vld [vmem:[%s821_s1 + $0x78] sm:$0xff]  ;;  %v302_v9 = vld [vmem:[%s821_s1 + $0x70] sm:$0xff]  ;;  %v301_v10 = vld [vmem:[%s821_s1 + $0x68] sm:$0xff]  ;;  %s832_s7 = smov (!%p277_p13, %s489_s7), 7 }
  0x27   : > { %499 = vmatpush.msra.mxu2 %v303_v8  ;;  %500 = vmatpush.msra.mxu3 %v303_v8  ;;  %v300_v11 = vld [vmem:[%s821_s1 + $0x60] sm:$0xff]  ;;  %v299_v12 = vld [vmem:[%s821_s1 + $0x58] sm:$0xff]  ;;  %v298_v13 = vld [vmem:[%s821_s1 + $0x50] sm:$0xff]  ;;  %s490_s27 = sshll.u32 %s832_s7, 3 }
  0x28   : > { %308 = vmatpush.msra.mxu0 %v303_v8  ;;  %498 = vmatpush.msra.mxu1 %v303_v8  ;;  %v297_v14 = vld [vmem:[%s821_s1 + $0x48] sm:$0xff]  ;;  %v296_v15 = vld [vmem:[%s821_s1 + $0x40] sm:$0xff]  ;;  %v295_v16 = vld [vmem:[%s821_s1 + $0x38] sm:$0xff]  ;;  %s280_s9 = scalar_lea.vmem %s820_s0, %s490_s27 }
  0x29   : > { %502 = vmatpush.msra.mxu2 %v302_v9  ;;  %503 = vmatpush.msra.mxu3 %v302_v9  ;;  %v294_v17 = vld [vmem:[%s821_s1 + $0x30] sm:$0xff]  ;;  %v293_v18 = vld [vmem:[%s821_s1 + $0x28] sm:$0xff]  ;;  %v292_v19 = vld [vmem:[%s821_s1 + $0x20] sm:$0xff] }
  0x2a   : > { %309 = vmatpush.msra.mxu0 %v302_v9  ;;  %501 = vmatpush.msra.mxu1 %v302_v9  ;;  %v291_v20 = vld [vmem:[%s821_s1 + $0x18] sm:$0xff]  ;;  %v290_v21 = vld [vmem:[%s821_s1 + $0x10] sm:$0xff]  ;;  %v289_v22 = vld [vmem:[%s821_s1 + $0x8] sm:$0xff] }
  0x2b   : > { %505 = vmatpush.msra.mxu2 %v301_v10  ;;  %506 = vmatpush.msra.mxu3 %v301_v10  ;;  %v288_v23 = vld [vmem:[%s821_s1] sm:$0xff]  ;;  %v286_v24 = vld [vmem:[%s280_s9 + $0x10] sm:$0xff]  ;;  %v287_v25 = vld [vmem:[%s280_s9 + $0x18] sm:$0xff] }
  0x2c   : > { %310 = vmatpush.msra.mxu0 %v301_v10  ;;  %504 = vmatpush.msra.mxu1 %v301_v10  ;;  %v284_v26 = vld [vmem:[%s280_s9] sm:$0xff]  ;;  %v285_v27 = vld [vmem:[%s280_s9 + $0x8] sm:$0xff]  ;;  %v339_v42 = vld [vmem:[%s248_s20 + $0x10] sm:$0xff] }
  0x2d   : > { %508 = vmatpush.msra.mxu2 %v300_v11  ;;  %509 = vmatpush.msra.mxu3 %v300_v11  ;;  %v598_v28 = vld [vmem:[%s822_s2] ss:$0 sm:$0xff]  ;;  %v338_v33 = vld [vmem:[%s248_s20 + $0x8] sm:$0xff]  ;;  %v343_v43 = vld [vmem:[%s248_s20 + $0x30] sm:$0xff] }
  0x2e   : > { %311 = vmatpush.msra.mxu0 %v300_v11  ;;  %507 = vmatpush.msra.mxu1 %v300_v11  ;;  %v337_v30 = vld [vmem:[%s248_s20] sm:$0xff]  ;;  %v342_v36 = vld [vmem:[%s248_s20 + $0x28] sm:$0xff]  ;;  %v340_v45 = vld [vmem:[%s248_s20 + $0x18] sm:$0xff] }
  0x2f   : > { %511 = vmatpush.msra.mxu2 %v299_v12  ;;  %512 = vmatpush.msra.mxu3 %v299_v12  ;;  %v341_v31 = vld [vmem:[%s248_s20 + $0x20] sm:$0xff]  ;;  %v344_v48 = vld [vmem:[%s248_s20 + $0x38] sm:$0xff] }
  0x30   : > { %312 = vmatpush.msra.mxu0 %v299_v12  ;;  %510 = vmatpush.msra.mxu1 %v299_v12 }
  0x31   : > { %514 = vmatpush.msra.mxu2 %v298_v13  ;;  %515 = vmatpush.msra.mxu3 %v298_v13 }
  0x32   : > { %313 = vmatpush.msra.mxu0 %v298_v13  ;;  %513 = vmatpush.msra.mxu1 %v298_v13 }
  0x33   : > { %517 = vmatpush.msra.mxu2 %v297_v14  ;;  %518 = vmatpush.msra.mxu3 %v297_v14 }
  0x34   : > { %314 = vmatpush.msra.mxu0 %v297_v14  ;;  %516 = vmatpush.msra.mxu1 %v297_v14 }
  0x35   : > { %520 = vmatpush.msra.mxu2 %v296_v15  ;;  %521 = vmatpush.msra.mxu3 %v296_v15 }
  0x36   : > { %315 = vmatpush.msra.mxu0 %v296_v15  ;;  %519 = vmatpush.msra.mxu1 %v296_v15 }
  0x37   : > { %523 = vmatpush.msra.mxu2 %v295_v16  ;;  %524 = vmatpush.msra.mxu3 %v295_v16 }
  0x38   : > { %316 = vmatpush.msra.mxu0 %v295_v16  ;;  %522 = vmatpush.msra.mxu1 %v295_v16 }
  0x39   : > { %526 = vmatpush.msra.mxu2 %v294_v17  ;;  %527 = vmatpush.msra.mxu3 %v294_v17 }
  0x3a   : > { %317 = vmatpush.msra.mxu0 %v294_v17  ;;  %525 = vmatpush.msra.mxu1 %v294_v17 }
  0x3b   : > { %529 = vmatpush.msra.mxu2 %v293_v18  ;;  %530 = vmatpush.msra.mxu3 %v293_v18 }
  0x3c   : > { %318 = vmatpush.msra.mxu0 %v293_v18  ;;  %528 = vmatpush.msra.mxu1 %v293_v18 }
  0x3d   : > { %532 = vmatpush.msra.mxu2 %v292_v19  ;;  %533 = vmatpush.msra.mxu3 %v292_v19 }
  0x3e   : > { %319 = vmatpush.msra.mxu0 %v292_v19  ;;  %531 = vmatpush.msra.mxu1 %v292_v19 }
  0x3f   : > { %535 = vmatpush.msra.mxu2 %v291_v20  ;;  %536 = vmatpush.msra.mxu3 %v291_v20 }
  0x40   : > { %320 = vmatpush.msra.mxu0 %v291_v20  ;;  %534 = vmatpush.msra.mxu1 %v291_v20 }
  0x41   : > { %538 = vmatpush.msra.mxu2 %v290_v21  ;;  %539 = vmatpush.msra.mxu3 %v290_v21 }
  0x42   : > { %321 = vmatpush.msra.mxu0 %v290_v21  ;;  %537 = vmatpush.msra.mxu1 %v290_v21 }
  0x43   : > { %541 = vmatpush.msra.mxu2 %v289_v22  ;;  %542 = vmatpush.msra.mxu3 %v289_v22 }
  0x44   : > { %322 = vmatpush.msra.mxu0 %v289_v22  ;;  %540 = vmatpush.msra.mxu1 %v289_v22 }
  0x45   : > { %544 = vmatpush.msra.mxu2 %v288_v23  ;;  %545 = vmatpush.msra.mxu3 %v288_v23 }
  0x46   : > { %330 = vmatmul.f32.vlgmr.msra.gmra.mxu2 %v286_v24  ;;  %333 = vmatmul.f32.vlgmr.msra.gmra.mxu3 %v287_v25 }
  0x47   : > { %323 = vmatpush.msra.mxu0 %v288_v23  ;;  %543 = vmatpush.msra.mxu1 %v288_v23 }
  0x48   : > { %324 = vmatmul.f32.vlgmr.msra.gmra.mxu0 %v284_v26  ;;  %327 = vmatmul.f32.vlgmr.msra.gmra.mxu1 %v285_v27 }
  0xc5   : > { %v325_v29 = vpop.f32.mrf.mxu0  ;;  %v328_v32 = vpop.f32.mrf.mxu1 }
  0xc6   : > { %v326_v34 = vadd.f32 %v598_v28, %v325_v29  ;;  %v329_v35 = vadd.f32 %v598_v28, %v328_v32 }
  0xc8   : > { %v345_v37 = vadd.f32 %v337_v30, %v326_v34  ;;  %v349_v38 = vadd.f32 %v341_v31, %v326_v34  ;;  %v346_v39 = vadd.f32 %v338_v33, %v329_v35  ;;  %v350_v40 = vadd.f32 %v342_v36, %v329_v35 }
  0xc9   : > { %v331_v41 = vpop.f32.mrf.mxu2  ;;  %v334_v44 = vpop.f32.mrf.mxu3 }
  0xca   : > { %353 = vst [vmem:[%s275_s22] sm:$0xff] %v345_v37  ;;  %v332_v46 = vadd.f32 %v598_v28, %v331_v41  ;;  %v335_v47 = vadd.f32 %v598_v28, %v334_v44 }
  0xcb   : > { %357 = vst [vmem:[%s275_s22 + $0x20] sm:$0xff] %v349_v38 }
  0xcc   : > { %354 = vst [vmem:[%s275_s22 + $0x8] sm:$0xff] %v346_v39  ;;  %v347_v49 = vadd.f32 %v339_v42, %v332_v46  ;;  %v351_v50 = vadd.f32 %v343_v43, %v332_v46  ;;  %v348_v51 = vadd.f32 %v340_v45, %v335_v47  ;;  %v352_v52 = vadd.f32 %v344_v48, %v335_v47 }
  0xcd   : > { %358 = vst [vmem:[%s275_s22 + $0x28] sm:$0xff] %v350_v40 }
  0xce   : > { %355 = vst [vmem:[%s275_s22 + $0x10] sm:$0xff] %v347_v49 }
  0xcf   : > { %359 = vst [vmem:[%s275_s22 + $0x30] sm:$0xff] %v351_v50 }
  0xd0   : > { %356 = vst [vmem:[%s275_s22 + $0x18] sm:$0xff] %v348_v51 }
  0xd1   : > { %360 = vst [vmem:[%s275_s22 + $0x38] sm:$0xff] %v352_v52 }
  0xd2   : > { %s497_s27 = sshll.u32 %s688_s19, 5  ;;  %s384_s28 = sshll.u32 %s275_s22, 4  ;;  %s385_s28 = int_to_ptr.vmem [resolvable:$true] %s384_s28 }
  0xd3   : > { %s373_s5 = scalar_lea.hbm %s824_s4, %s497_s27  ;;  %s635_s8 = smov 512  }
  0xd4   : > { %s386_s6 = sshll.u32 %s373_s5, 4  ;;  %546 = sst [smem:[#allocation6]] (%p706_p6), %s635_s8  ;;  %s387_s6 = int_to_ptr.hbm [resolvable:$true] %s386_s6 }
  0xd5   : > { %s636_s9 = smov 1024   ;;  %s637_s7 = smov 4  }
  0xd6   : > { %547 = sst [smem:[#allocation6 + $0x1]] (%p706_p6), %s636_s9  ;;  %s638_s19 = smov 128  }
  0xd7   : > { %548 = sst [smem:[#allocation6 + $0x2]] (%p706_p6), %s637_s7  ;;  %s639_s10 = smov 8  }
  0xd8   : > { %549 = sst [smem:[#allocation6 + $0x3]] (%p706_p6), %s638_s19  ;;  %s640_s11 = smov [#allocation5]  }
  0xd9   : > { %550 = sst [smem:[#allocation6 + $0x4]] (%p706_p6), %s638_s19  ;;  %s641_s12 = smov 0  }
  0xda   : > { %551 = sst [smem:[#allocation6 + $0x5]] (%p706_p6), %s639_s10 }
  0xdb   : > { %552 = dma.general (%p706_p6), %s385_s28, 1024, %s387_s6, %s362_s23, %s640_s11, [#allocation6], %s641_s12, 0  }
  0xdc PF: > { %s414_s13 = sand.u32 1, %s621_s15   ;;  %p555_p0 = pnand %p482_p9, %p710_p8 }
  0xdd   : > { %s415_s14 = scalar_lea.sflag [#allocation4], %s414_s13 }
  0xde   : > { %p556_p1 = pneg %p555_p0 }
  0xe0   : > { %616 = dma.done.wait (%p556_p1), %s415_s14, 1024  }
  0xe1   : > { %618 = vsyncadd (%p556_p1), %s415_s14, 4294966272  ;;  %p14_p2 = scmp.ge.s32.totalorder %s692_s21, 4   ;;  %s827_s15 = smov %s625_s16 }
  0xe2   : > { %s828_s16 = smov %s629_s17  ;;  %s829_s17 = smov %s704_s24 }
  0xe3   : > { %s830_s18 = smov %s692_s21  ;;  %16 = sbr.rel (!%p14_p2) target bundleno = 3 (0x3), region = 122 }
  0xe8   :  { %421 = vsyncpa [#allocation4], 1 }
  0xe9   :  { %423 = vsyncpa [#allocation4 + $0x1], 1 }

</bundles_post_ra>
